<compile_context>
chip_gen: v7x
topology: tpu7x:2x2x1
jax: 0.10.0
libtpu: 0.0.40
codegen_flags: <defaults>
</compile_context>

<pallas_src>
import functools

import numpy as np
import jax
import jax.numpy as jnp
from jax.experimental import pallas as pl
from jax.experimental.pallas import tpu as pltpu


def _dice_accum_kernel(x_ref, t_ref, inter_ref, card_ref, *, num_classes, sub):
    """Accumulates per-(class, packed-lane) intersection / cardinality sums.

    x_ref:               (C, tH, Wp) logits block
    t_ref:               (tH, Wp)    int32 class-index block
    inter_ref/card_ref:  (C, sub, Wp) per-core accumulators (grid-resident)
    """
    b = pl.program_id(1)
    h = pl.program_id(2)

    @pl.when((b == 0) & (h == 0))
    def _init():
        inter_ref[...] = jnp.zeros_like(inter_ref)
        card_ref[...] = jnp.zeros_like(card_ref)

    x = x_ref[...].astype(jnp.float32)      # (C, tH, Wp), cast in VMEM
    t = t_ref[...]                          # (tH, Wp) int32
    tH, Wp = t.shape

    # Numerically-stable softmax over the class axis: one EUP exp pass and a
    # single exact reciprocal per pixel (instead of a divide per class/pixel).
    m = jnp.max(x, axis=0)                  # (tH, Wp)   cross-"page" VPU max
    e = jnp.exp(x - m[None])                # (C, tH, Wp)
    inv = 1.0 / jnp.sum(e, axis=0)          # (tH, Wp)

    # Fused per-class loop (static, fully unrolled): select-based one-hot, no
    # (C, tH, Wp) one-hot/product temporaries, no concatenate; the sublane
    # reduction is a vreg-aligned reshape + element-wise VPU adds.
    for c in range(num_classes):
        p_c = e[c] * inv                                  # (tH, Wp) softmax prob
        mask = t == c                                     # (tH, Wp)
        inter_c = jnp.where(mask, p_c, 0.0)               # p_c * one_hot
        card_c = jnp.where(mask, p_c + 1.0, p_c)          # p_c + one_hot
        if sub > 1:
            inter_part = inter_c.reshape(tH // sub, sub, Wp).sum(axis=0)
            card_part = card_c.reshape(tH // sub, sub, Wp).sum(axis=0)
        else:
            inter_part = jnp.sum(inter_c, axis=0, keepdims=True)
            card_part = jnp.sum(card_c, axis=0, keepdims=True)
        inter_ref[c] += inter_part                        # (sub, Wp)
        card_ref[c] += card_part


def _lane_pack_factor(H, W, max_lanes=2048):
    """Pick k dividing H so Wp = k*W is as lane-dense and wide as possible."""
    if W >= max_lanes:
        return 1

    def util(wp):
        return wp / (((wp + 127) // 128) * 128)

    best_k, best_u, best_wp = 1, util(W), W
    for k in range(2, H + 1):
        if H % k:
            continue
        wp = k * W
        if wp > max_lanes:
            break
        u = util(wp)
        if u > best_u + 1e-12 or (abs(u - best_u) <= 1e-12 and wp > best_wp):
            best_k, best_u, best_wp = k, u, wp
    return best_k


def _vmem_capacity_bytes():
    """Physical VMEM bytes for this generation (conservative fallback)."""
    try:
        info = pltpu.get_tpu_info()
        for attr in ("vmem_capacity_bytes", "vmem_size_bytes", "vmem_bytes"):
            v = getattr(info, attr, None)
            if v:
                return int(v)
    except Exception:
        pass
    return 64 * 1024 * 1024     # v7x-sized default


def _choose_h_tile(Hp, per_row_bytes, budget_bytes):
    """Largest multiple-of-8 divisor of Hp (or Hp itself) fitting the budget."""
    max_rows = max(1, budget_bytes // max(per_row_bytes, 1))
    if Hp <= max_rows:
        return Hp
    divisors8 = [th for th in range(8, Hp, 8) if Hp % th == 0]
    fitting = [th for th in divisors8 if th <= max_rows]
    if fitting:
        return max(fitting)
    if divisors8:
        # Nothing fits the budget: take the smallest legal tile (bounded
        # blow-up) rather than the full extent; vmem_limit is raised to match.
        return min(divisors8)
    # Hp < 8 or awkwardly factored: a full-extent block is still a legal shape.
    return Hp


def log_cosh_dice_loss(inputs, targets, eps=1e-8, smooth=1.0):
    """inputs: [B, C, H, W] float logits, targets: [B, H, W] int -> scalar loss."""
    B, C, H, W = inputs.shape
    if targets.dtype != jnp.int32:
        targets = targets.astype(jnp.int32)

    # Lane packing: [B,C,H,W] -> [B,C,Hp,Wp] with Wp = k*W (contiguous reshape).
    k = _lane_pack_factor(H, W)
    Hp, Wp = H // k, k * W
    x = inputs.reshape(B, C, Hp, Wp)
    t = targets.reshape(B, Hp, Wp)

    # Generation-aware VMEM budget (v5e/v6e: 128 MiB physical, v7x: 64 MiB).
    cap = _vmem_capacity_bytes()
    big_vmem = cap >= 100 * 1024 * 1024
    base_limit = min(int(cap * 0.85), (80 if big_vmem else 40) * 1024 * 1024)

    # True per-tile-row footprint: double-buffered input + target blocks plus
    # the in-kernel f32 intermediates (x cast, e, m/inv/per-class temporaries).
    in_isz = inputs.dtype.itemsize
    per_row_bytes = Wp * (2 * C * in_isz       # double-buffered logits block
                          + 2 * 4              # double-buffered int32 targets
                          + 2 * C * 4          # f32 x and e temporaries
                          + 5 * 4)             # m, inv, per-class temporaries
    tH = _choose_h_tile(Hp, per_row_bytes, budget_bytes=int(base_limit * 0.55))
    sub = 8 if tH % 8 == 0 else 1
    NH = Hp // tH

    # Megacore split (v7x): leading "parallel" axis over B (preferred) or the
    # H-tile axis; each core gets its own accumulator slab along that axis.
    if B % 2 == 0:
        P, GB, GH, split = 2, B // 2, NH, "b"
    elif NH % 2 == 0:
        P, GB, GH, split = 2, B, NH // 2, "h"
    else:
        P, GB, GH, split = 1, B, NH, "b"

    if split == "b":
        x_map = lambda p, b, h: (p * GB + b, 0, h, 0)
        t_map = lambda p, b, h: (p * GB + b, h, 0)
    else:
        x_map = lambda p, b, h: (b, 0, p * GH + h, 0)
        t_map = lambda p, b, h: (b, p * GH + h, 0)
    out_map = lambda p, b, h: (p, 0, 0, 0)

    out_bytes = 2 * C * sub * Wp * 4
    needed = per_row_bytes * tH + 2 * out_bytes
    vmem_limit = int(min(cap * 0.9, max(base_limit, needed * 1.4)))

    kernel = functools.partial(_dice_accum_kernel, num_classes=C, sub=sub)

    inter_p, card_p = pl.pallas_call(
        kernel,
        out_shape=(jax.ShapeDtypeStruct((P, C, sub, Wp), jnp.float32),
                   jax.ShapeDtypeStruct((P, C, sub, Wp), jnp.float32)),
        grid_spec=pltpu.PrefetchScalarGridSpec(
            num_scalar_prefetch=0,
            grid=(P, GB, GH),
            in_specs=[
                pl.BlockSpec((pl.Squeezed(), C, tH, Wp), x_map),
                pl.BlockSpec((pl.Squeezed(), tH, Wp), t_map),
            ],
            out_specs=[
                pl.BlockSpec((pl.Squeezed(), C, sub, Wp), out_map),
                pl.BlockSpec((pl.Squeezed(), C, sub, Wp), out_map),
            ],
        ),
        compiler_params=pltpu.CompilerParams(
            # Axis 0 writes disjoint per-core accumulator slabs -> "parallel"
            # (both TensorCores on v7x); (b, h) share a slab -> "arbitrary".
            dimension_semantics=("parallel", "arbitrary", "arbitrary"),
            vmem_limit_bytes=vmem_limit,
        ),
    )(x, t)

    # Tiny O(C*W) epilogue: fold the per-core slabs, the sublane groups and the
    # k packed lane groups back to (C, W), then dice + log-cosh on a scalar.
    inter = inter_p.sum(axis=(0, 2)).reshape(C, k, W).sum(axis=1)
    card = card_p.sum(axis=(0, 2)).reshape(C, k, W).sum(axis=1)
    dice = jnp.mean((2.0 * inter + smooth) / (card + smooth))
    return jnp.log(jnp.cosh(1.0 - dice + eps))


def _reference_loss(inputs, targets, eps=1e-8, smooth=1.0):
    """Pure-JAX mirror of the PyTorch forward (for verification)."""
    C = inputs.shape[1]
    probas = jax.nn.softmax(inputs.astype(jnp.float32), axis=1)
    one_hot = jax.nn.one_hot(targets, C, dtype=jnp.float32)        # [B,H,W,C]
    one_hot = jnp.transpose(one_hot, (0, 3, 1, 2))                 # [B,C,H,W]
    dims = (0, 2)  # dims = (0,) + range(2, targets.ndim) for 3-D targets
    intersection = jnp.sum(probas * one_hot, axis=dims)
    cardinality = jnp.sum(probas + one_hot, axis=dims)
    dice = jnp.mean((2.0 * intersection + smooth) / (cardinality + smooth))
    return jnp.log(jnp.cosh(1.0 - dice + eps))


if __name__ == "__main__":
    key = jax.random.PRNGKey(0)
    k_x, k_t = jax.random.split(key)

    B, C, H, W = 2, 4, 16, 16
    inputs = jax.random.normal(k_x, (B, C, H, W), dtype=jnp.float32)
    targets = jax.random.randint(k_t, (B, H, W), 0, C, dtype=jnp.int32)

    loss = jax.block_until_ready(log_cosh_dice_loss(inputs, targets))
    ref = jax.block_until_ready(_reference_loss(inputs, targets))
    assert np.allclose(np.asarray(loss), np.asarray(ref), rtol=1e-5, atol=1e-6), (
        f"kernel={float(loss)} ref={float(ref)}")

    print("KERNEL_OK")
</pallas_src>

<mosaic_0001>
module attributes {stable_mosaic.version = 11 : i64} {
  func.func @_dice_accum_kernel(%arg0: i32, %arg1: i32, %arg2: i32, %arg3: memref<1x4x1x256xf32, #tpu.memory_space<vmem>>, %arg4: memref<1x1x256xi32, #tpu.memory_space<vmem>>, %arg5: memref<1x4x1x256xf32, #tpu.memory_space<vmem>>, %arg6: memref<1x4x1x256xf32, #tpu.memory_space<vmem>>) attributes {dimension_semantics = [#tpu.dimension_semantics<parallel>, #tpu.dimension_semantics<arbitrary>, #tpu.dimension_semantics<arbitrary>], iteration_bounds = array<i64: 2, 1, 1>, scalar_prefetch = 0 : i64, scratch_operands = 0 : i64, tpu.core_type = #tpu.core_type<tc>, window_params = [{transform_indices = @transform_0, window_bounds = array<i64: 1, 4, 1, 256>}, {transform_indices = @transform_1, window_bounds = array<i64: 1, 1, 256>}, {transform_indices = @transform_2, window_bounds = array<i64: 1, 4, 1, 256>}, {transform_indices = @transform_3, window_bounds = array<i64: 1, 4, 1, 256>}]} {
    %c0_i32 = arith.constant 0 : i32
    %0 = arith.cmpi eq, %arg1, %c0_i32 : i32
    %c0_i32_0 = arith.constant 0 : i32
    %1 = arith.cmpi eq, %arg2, %c0_i32_0 : i32
    %2 = arith.andi %0, %1 : i1
    %3 = arith.extui %2 : i1 to i32
    %c0_i32_1 = arith.constant 0 : i32
    %4 = arith.cmpi ne, %3, %c0_i32_1 : i32
    scf.if %4 {
      %cst_88 = arith.constant 0.000000e+00 : f32
      %121 = vector.broadcast %cst_88 : f32 to vector<4x1x256xf32>
      %c0_89 = arith.constant 0 : index
      %c0_90 = arith.constant 0 : index
      %c0_91 = arith.constant 0 : index
      %c0_92 = arith.constant 0 : index
      %122 = vector.load %arg5[%c0_89, %c0_90, %c0_91, %c0_92] : memref<1x4x1x256xf32, #tpu.memory_space<vmem>>, vector<1x4x1x256xf32>
      %123 = vector.shape_cast %122 : vector<1x4x1x256xf32> to vector<4x1x256xf32>
      %124 = vector.shape_cast %121 : vector<4x1x256xf32> to vector<1x4x1x256xf32>
      tpu.vector_store %arg5[%c0_89, %c0_90, %c0_91, %c0_92], %124 {strides = array<i32>} : memref<1x4x1x256xf32, #tpu.memory_space<vmem>>, vector<1x4x1x256xf32>,
      %cst_93 = arith.constant 0.000000e+00 : f32
      %125 = vector.broadcast %cst_93 : f32 to vector<4x1x256xf32>
      %c0_94 = arith.constant 0 : index
      %c0_95 = arith.constant 0 : index
      %c0_96 = arith.constant 0 : index
      %c0_97 = arith.constant 0 : index
      %126 = vector.load %arg6[%c0_94, %c0_95, %c0_96, %c0_97] : memref<1x4x1x256xf32, #tpu.memory_space<vmem>>, vector<1x4x1x256xf32>
      %127 = vector.shape_cast %126 : vector<1x4x1x256xf32> to vector<4x1x256xf32>
      %128 = vector.shape_cast %125 : vector<4x1x256xf32> to vector<1x4x1x256xf32>
      tpu.vector_store %arg6[%c0_94, %c0_95, %c0_96, %c0_97], %128 {strides = array<i32>} : memref<1x4x1x256xf32, #tpu.memory_space<vmem>>, vector<1x4x1x256xf32>,
    } else {
    }
    %c0 = arith.constant 0 : index
    %c0_2 = arith.constant 0 : index
    %c0_3 = arith.constant 0 : index
    %c0_4 = arith.constant 0 : index
    %5 = vector.load %arg3[%c0, %c0_2, %c0_3, %c0_4] : memref<1x4x1x256xf32, #tpu.memory_space<vmem>>, vector<1x4x1x256xf32>
    %6 = vector.shape_cast %5 : vector<1x4x1x256xf32> to vector<4x1x256xf32>
    %c0_5 = arith.constant 0 : index
    %c0_6 = arith.constant 0 : index
    %c0_7 = arith.constant 0 : index
    %7 = vector.load %arg4[%c0_5, %c0_6, %c0_7] : memref<1x1x256xi32, #tpu.memory_space<vmem>>, vector<1x1x256xi32>
    %8 = vector.shape_cast %7 : vector<1x1x256xi32> to vector<1x256xi32>
    %cst = arith.constant dense<0xFF800000> : vector<1x256xf32>
    %9 = vector.multi_reduction <maximumf>, %6, %cst [0] : vector<4x1x256xf32> to vector<1x256xf32>
    %10 = vector.shape_cast %9 : vector<1x256xf32> to vector<1x1x256xf32>
    %11 = vector.broadcast %10 : vector<1x1x256xf32> to vector<4x1x256xf32>
    %12 = arith.subf %6, %11 : vector<4x1x256xf32>
    %13 = math.exp %12 : vector<4x1x256xf32>
    %cst_8 = arith.constant dense<0.000000e+00> : vector<1x256xf32>
    %14 = vector.multi_reduction <add>, %13, %cst_8 [0] : vector<4x1x256xf32> to vector<1x256xf32>
    %cst_9 = arith.constant 1.000000e+00 : f32
    %15 = vector.broadcast %cst_9 : f32 to vector<1x256xf32>
    %16 = arith.divf %15, %14 : vector<1x256xf32>
    %17 = vector.extract_strided_slice %13 {offsets = [0, 0, 0], sizes = [1, 1, 256], strides = [1, 1, 1]} : vector<4x1x256xf32> to vector<1x1x256xf32>
    %18 = vector.shape_cast %17 : vector<1x1x256xf32> to vector<1x256xf32>
    %19 = arith.mulf %18, %16 : vector<1x256xf32>
    %c0_i32_10 = arith.constant 0 : i32
    %20 = vector.broadcast %c0_i32_10 : i32 to vector<1x256xi32>
    %21 = arith.cmpi eq, %8, %20 : vector<1x256xi32>
    %cst_11 = arith.constant 0.000000e+00 : f32
    %22 = vector.broadcast %cst_11 : f32 to vector<1x256xf32>
    %23 = arith.select %21, %19, %22 : vector<1x256xi1>, vector<1x256xf32>
    %cst_12 = arith.constant 1.000000e+00 : f32
    %24 = vector.broadcast %cst_12 : f32 to vector<1x256xf32>
    %25 = arith.addf %19, %24 : vector<1x256xf32>
    %26 = arith.select %21, %25, %19 : vector<1x256xi1>, vector<1x256xf32>
    %cst_13 = arith.constant dense<0.000000e+00> : vector<256xf32>
    %27 = vector.multi_reduction <add>, %23, %cst_13 [0] : vector<1x256xf32> to vector<256xf32>
    %28 = vector.shape_cast %27 : vector<256xf32> to vector<1x256xf32>
    %cst_14 = arith.constant dense<0.000000e+00> : vector<256xf32>
    %29 = vector.multi_reduction <add>, %26, %cst_14 [0] : vector<1x256xf32> to vector<256xf32>
    %30 = vector.shape_cast %29 : vector<256xf32> to vector<1x256xf32>
    %c0_15 = arith.constant 0 : index
    %c0_16 = arith.constant 0 : index
    %c0_17 = arith.constant 0 : index
    %c0_18 = arith.constant 0 : index
    %31 = vector.load %arg5[%c0_15, %c0_16, %c0_17, %c0_18] : memref<1x4x1x256xf32, #tpu.memory_space<vmem>>, vector<1x1x1x256xf32>
    %32 = vector.shape_cast %31 : vector<1x1x1x256xf32> to vector<1x256xf32>
    %33 = arith.addf %32, %28 : vector<1x256xf32>
    %c0_19 = arith.constant 0 : index
    %c0_20 = arith.constant 0 : index
    %c0_21 = arith.constant 0 : index
    %c0_22 = arith.constant 0 : index
    %34 = vector.load %arg5[%c0_19, %c0_20, %c0_21, %c0_22] : memref<1x4x1x256xf32, #tpu.memory_space<vmem>>, vector<1x1x1x256xf32>
    %35 = vector.shape_cast %34 : vector<1x1x1x256xf32> to vector<1x256xf32>
    %36 = vector.shape_cast %33 : vector<1x256xf32> to vector<1x1x1x256xf32>
    tpu.vector_store %arg5[%c0_19, %c0_20, %c0_21, %c0_22], %36 {strides = array<i32>} : memref<1x4x1x256xf32, #tpu.memory_space<vmem>>, vector<1x1x1x256xf32>,
    %c0_23 = arith.constant 0 : index
    %c0_24 = arith.constant 0 : index
    %c0_25 = arith.constant 0 : index
    %c0_26 = arith.constant 0 : index
    %37 = vector.load %arg6[%c0_23, %c0_24, %c0_25, %c0_26] : memref<1x4x1x256xf32, #tpu.memory_space<vmem>>, vector<1x1x1x256xf32>
    %38 = vector.shape_cast %37 : vector<1x1x1x256xf32> to vector<1x256xf32>
    %39 = arith.addf %38, %30 : vector<1x256xf32>
    %c0_27 = arith.constant 0 : index
    %c0_28 = arith.constant 0 : index
    %c0_29 = arith.constant 0 : index
    %c0_30 = arith.constant 0 : index
    %40 = vector.load %arg6[%c0_27, %c0_28, %c0_29, %c0_30] : memref<1x4x1x256xf32, #tpu.memory_space<vmem>>, vector<1x1x1x256xf32>
    %41 = vector.shape_cast %40 : vector<1x1x1x256xf32> to vector<1x256xf32>
    %42 = vector.shape_cast %39 : vector<1x256xf32> to vector<1x1x1x256xf32>
    tpu.vector_store %arg6[%c0_27, %c0_28, %c0_29, %c0_30], %42 {strides = array<i32>} : memref<1x4x1x256xf32, #tpu.memory_space<vmem>>, vector<1x1x1x256xf32>,
    %43 = vector.extract_strided_slice %13 {offsets = [1, 0, 0], sizes = [1, 1, 256], strides = [1, 1, 1]} : vector<4x1x256xf32> to vector<1x1x256xf32>
    %44 = vector.shape_cast %43 : vector<1x1x256xf32> to vector<1x256xf32>
    %45 = arith.mulf %44, %16 : vector<1x256xf32>
    %c1_i32 = arith.constant 1 : i32
    %46 = vector.broadcast %c1_i32 : i32 to vector<1x256xi32>
    %47 = arith.cmpi eq, %8, %46 : vector<1x256xi32>
    %cst_31 = arith.constant 0.000000e+00 : f32
    %48 = vector.broadcast %cst_31 : f32 to vector<1x256xf32>
    %49 = arith.select %47, %45, %48 : vector<1x256xi1>, vector<1x256xf32>
    %cst_32 = arith.constant 1.000000e+00 : f32
    %50 = vector.broadcast %cst_32 : f32 to vector<1x256xf32>
    %51 = arith.addf %45, %50 : vector<1x256xf32>
    %52 = arith.select %47, %51, %45 : vector<1x256xi1>, vector<1x256xf32>
    %cst_33 = arith.constant dense<0.000000e+00> : vector<256xf32>
    %53 = vector.multi_reduction <add>, %49, %cst_33 [0] : vector<1x256xf32> to vector<256xf32>
    %54 = vector.shape_cast %53 : vector<256xf32> to vector<1x256xf32>
    %cst_34 = arith.constant dense<0.000000e+00> : vector<256xf32>
    %55 = vector.multi_reduction <add>, %52, %cst_34 [0] : vector<1x256xf32> to vector<256xf32>
    %56 = vector.shape_cast %55 : vector<256xf32> to vector<1x256xf32>
    %c0_35 = arith.constant 0 : index
    %c1 = arith.constant 1 : index
    %c0_36 = arith.constant 0 : index
    %c0_37 = arith.constant 0 : index
    %57 = vector.load %arg5[%c0_35, %c1, %c0_36, %c0_37] : memref<1x4x1x256xf32, #tpu.memory_space<vmem>>, vector<1x1x1x256xf32>
    %58 = vector.shape_cast %57 : vector<1x1x1x256xf32> to vector<1x256xf32>
    %59 = arith.addf %58, %54 : vector<1x256xf32>
    %c0_38 = arith.constant 0 : index
    %c1_39 = arith.constant 1 : index
    %c0_40 = arith.constant 0 : index
    %c0_41 = arith.constant 0 : index
    %60 = vector.load %arg5[%c0_38, %c1_39, %c0_40, %c0_41] : memref<1x4x1x256xf32, #tpu.memory_space<vmem>>, vector<1x1x1x256xf32>
    %61 = vector.shape_cast %60 : vector<1x1x1x256xf32> to vector<1x256xf32>
    %62 = vector.shape_cast %59 : vector<1x256xf32> to vector<1x1x1x256xf32>
    tpu.vector_store %arg5[%c0_38, %c1_39, %c0_40, %c0_41], %62 {strides = array<i32>} : memref<1x4x1x256xf32, #tpu.memory_space<vmem>>, vector<1x1x1x256xf32>,
    %c0_42 = arith.constant 0 : index
    %c1_43 = arith.constant 1 : index
    %c0_44 = arith.constant 0 : index
    %c0_45 = arith.constant 0 : index
    %63 = vector.load %arg6[%c0_42, %c1_43, %c0_44, %c0_45] : memref<1x4x1x256xf32, #tpu.memory_space<vmem>>, vector<1x1x1x256xf32>
    %64 = vector.shape_cast %63 : vector<1x1x1x256xf32> to vector<1x256xf32>
    %65 = arith.addf %64, %56 : vector<1x256xf32>
    %c0_46 = arith.constant 0 : index
    %c1_47 = arith.constant 1 : index
    %c0_48 = arith.constant 0 : index
    %c0_49 = arith.constant 0 : index
    %66 = vector.load %arg6[%c0_46, %c1_47, %c0_48, %c0_49] : memref<1x4x1x256xf32, #tpu.memory_space<vmem>>, vector<1x1x1x256xf32>
    %67 = vector.shape_cast %66 : vector<1x1x1x256xf32> to vector<1x256xf32>
    %68 = vector.shape_cast %65 : vector<1x256xf32> to vector<1x1x1x256xf32>
    tpu.vector_store %arg6[%c0_46, %c1_47, %c0_48, %c0_49], %68 {strides = array<i32>} : memref<1x4x1x256xf32, #tpu.memory_space<vmem>>, vector<1x1x1x256xf32>,
    %69 = vector.extract_strided_slice %13 {offsets = [2, 0, 0], sizes = [1, 1, 256], strides = [1, 1, 1]} : vector<4x1x256xf32> to vector<1x1x256xf32>
    %70 = vector.shape_cast %69 : vector<1x1x256xf32> to vector<1x256xf32>
    %71 = arith.mulf %70, %16 : vector<1x256xf32>
    %c2_i32 = arith.constant 2 : i32
    %72 = vector.broadcast %c2_i32 : i32 to vector<1x256xi32>
    %73 = arith.cmpi eq, %8, %72 : vector<1x256xi32>
    %cst_50 = arith.constant 0.000000e+00 : f32
    %74 = vector.broadcast %cst_50 : f32 to vector<1x256xf32>
    %75 = arith.select %73, %71, %74 : vector<1x256xi1>, vector<1x256xf32>
    %cst_51 = arith.constant 1.000000e+00 : f32
    %76 = vector.broadcast %cst_51 : f32 to vector<1x256xf32>
    %77 = arith.addf %71, %76 : vector<1x256xf32>
    %78 = arith.select %73, %77, %71 : vector<1x256xi1>, vector<1x256xf32>
    %cst_52 = arith.constant dense<0.000000e+00> : vector<256xf32>
    %79 = vector.multi_reduction <add>, %75, %cst_52 [0] : vector<1x256xf32> to vector<256xf32>
    %80 = vector.shape_cast %79 : vector<256xf32> to vector<1x256xf32>
    %cst_53 = arith.constant dense<0.000000e+00> : vector<256xf32>
    %81 = vector.multi_reduction <add>, %78, %cst_53 [0] : vector<1x256xf32> to vector<256xf32>
    %82 = vector.shape_cast %81 : vector<256xf32> to vector<1x256xf32>
    %c0_54 = arith.constant 0 : index
    %c2 = arith.constant 2 : index
    %c0_55 = arith.constant 0 : index
    %c0_56 = arith.constant 0 : index
    %83 = vector.load %arg5[%c0_54, %c2, %c0_55, %c0_56] : memref<1x4x1x256xf32, #tpu.memory_space<vmem>>, vector<1x1x1x256xf32>
    %84 = vector.shape_cast %83 : vector<1x1x1x256xf32> to vector<1x256xf32>
    %85 = arith.addf %84, %80 : vector<1x256xf32>
    %c0_57 = arith.constant 0 : index
    %c2_58 = arith.constant 2 : index
    %c0_59 = arith.constant 0 : index
    %c0_60 = arith.constant 0 : index
    %86 = vector.load %arg5[%c0_57, %c2_58, %c0_59, %c0_60] : memref<1x4x1x256xf32, #tpu.memory_space<vmem>>, vector<1x1x1x256xf32>
    %87 = vector.shape_cast %86 : vector<1x1x1x256xf32> to vector<1x256xf32>
    %88 = vector.shape_cast %85 : vector<1x256xf32> to vector<1x1x1x256xf32>
    tpu.vector_store %arg5[%c0_57, %c2_58, %c0_59, %c0_60], %88 {strides = array<i32>} : memref<1x4x1x256xf32, #tpu.memory_space<vmem>>, vector<1x1x1x256xf32>,
    %c0_61 = arith.constant 0 : index
    %c2_62 = arith.constant 2 : index
    %c0_63 = arith.constant 0 : index
    %c0_64 = arith.constant 0 : index
    %89 = vector.load %arg6[%c0_61, %c2_62, %c0_63, %c0_64] : memref<1x4x1x256xf32, #tpu.memory_space<vmem>>, vector<1x1x1x256xf32>
    %90 = vector.shape_cast %89 : vector<1x1x1x256xf32> to vector<1x256xf32>
    %91 = arith.addf %90, %82 : vector<1x256xf32>
    %c0_65 = arith.constant 0 : index
    %c2_66 = arith.constant 2 : index
    %c0_67 = arith.constant 0 : index
    %c0_68 = arith.constant 0 : index
    %92 = vector.load %arg6[%c0_65, %c2_66, %c0_67, %c0_68] : memref<1x4x1x256xf32, #tpu.memory_space<vmem>>, vector<1x1x1x256xf32>
    %93 = vector.shape_cast %92 : vector<1x1x1x256xf32> to vector<1x256xf32>
    %94 = vector.shape_cast %91 : vector<1x256xf32> to vector<1x1x1x256xf32>
    tpu.vector_store %arg6[%c0_65, %c2_66, %c0_67, %c0_68], %94 {strides = array<i32>} : memref<1x4x1x256xf32, #tpu.memory_space<vmem>>, vector<1x1x1x256xf32>,
    %95 = vector.extract_strided_slice %13 {offsets = [3, 0, 0], sizes = [1, 1, 256], strides = [1, 1, 1]} : vector<4x1x256xf32> to vector<1x1x256xf32>
    %96 = vector.shape_cast %95 : vector<1x1x256xf32> to vector<1x256xf32>
    %97 = arith.mulf %96, %16 : vector<1x256xf32>
    %c3_i32 = arith.constant 3 : i32
    %98 = vector.broadcast %c3_i32 : i32 to vector<1x256xi32>
    %99 = arith.cmpi eq, %8, %98 : vector<1x256xi32>
    %cst_69 = arith.constant 0.000000e+00 : f32
    %100 = vector.broadcast %cst_69 : f32 to vector<1x256xf32>
    %101 = arith.select %99, %97, %100 : vector<1x256xi1>, vector<1x256xf32>
    %cst_70 = arith.constant 1.000000e+00 : f32
    %102 = vector.broadcast %cst_70 : f32 to vector<1x256xf32>
    %103 = arith.addf %97, %102 : vector<1x256xf32>
    %104 = arith.select %99, %103, %97 : vector<1x256xi1>, vector<1x256xf32>
    %cst_71 = arith.constant dense<0.000000e+00> : vector<256xf32>
    %105 = vector.multi_reduction <add>, %101, %cst_71 [0] : vector<1x256xf32> to vector<256xf32>
    %106 = vector.shape_cast %105 : vector<256xf32> to vector<1x256xf32>
    %cst_72 = arith.constant dense<0.000000e+00> : vector<256xf32>
    %107 = vector.multi_reduction <add>, %104, %cst_72 [0] : vector<1x256xf32> to vector<256xf32>
    %108 = vector.shape_cast %107 : vector<256xf32> to vector<1x256xf32>
    %c0_73 = arith.constant 0 : index
    %c3 = arith.constant 3 : index
    %c0_74 = arith.constant 0 : index
    %c0_75 = arith.constant 0 : index
    %109 = vector.load %arg5[%c0_73, %c3, %c0_74, %c0_75] : memref<1x4x1x256xf32, #tpu.memory_space<vmem>>, vector<1x1x1x256xf32>
    %110 = vector.shape_cast %109 : vector<1x1x1x256xf32> to vector<1x256xf32>
    %111 = arith.addf %110, %106 : vector<1x256xf32>
    %c0_76 = arith.constant 0 : index
    %c3_77 = arith.constant 3 : index
    %c0_78 = arith.constant 0 : index
    %c0_79 = arith.constant 0 : index
    %112 = vector.load %arg5[%c0_76, %c3_77, %c0_78, %c0_79] : memref<1x4x1x256xf32, #tpu.memory_space<vmem>>, vector<1x1x1x256xf32>
    %113 = vector.shape_cast %112 : vector<1x1x1x256xf32> to vector<1x256xf32>
    %114 = vector.shape_cast %111 : vector<1x256xf32> to vector<1x1x1x256xf32>
    tpu.vector_store %arg5[%c0_76, %c3_77, %c0_78, %c0_79], %114 {strides = array<i32>} : memref<1x4x1x256xf32, #tpu.memory_space<vmem>>, vector<1x1x1x256xf32>,
    %c0_80 = arith.constant 0 : index
    %c3_81 = arith.constant 3 : index
    %c0_82 = arith.constant 0 : index
    %c0_83 = arith.constant 0 : index
    %115 = vector.load %arg6[%c0_80, %c3_81, %c0_82, %c0_83] : memref<1x4x1x256xf32, #tpu.memory_space<vmem>>, vector<1x1x1x256xf32>
    %116 = vector.shape_cast %115 : vector<1x1x1x256xf32> to vector<1x256xf32>
    %117 = arith.addf %116, %108 : vector<1x256xf32>
    %c0_84 = arith.constant 0 : index
    %c3_85 = arith.constant 3 : index
    %c0_86 = arith.constant 0 : index
    %c0_87 = arith.constant 0 : index
    %118 = vector.load %arg6[%c0_84, %c3_85, %c0_86, %c0_87] : memref<1x4x1x256xf32, #tpu.memory_space<vmem>>, vector<1x1x1x256xf32>
    %119 = vector.shape_cast %118 : vector<1x1x1x256xf32> to vector<1x256xf32>
    %120 = vector.shape_cast %117 : vector<1x256xf32> to vector<1x1x1x256xf32>
    tpu.vector_store %arg6[%c0_84, %c3_85, %c0_86, %c0_87], %120 {strides = array<i32>} : memref<1x4x1x256xf32, #tpu.memory_space<vmem>>, vector<1x1x1x256xf32>,
    return
  }
  func.func @transform_0(%arg0: i32, %arg1: i32, %arg2: i32) -> (i32, i32, i32, i32) {
    %c1_i32 = arith.constant 1 : i32
    %0 = arith.muli %arg0, %c1_i32 : i32
    %1 = arith.addi %0, %arg1 : i32
    %c0_i32 = arith.constant 0 : i32
    %c0_i32_0 = arith.constant 0 : i32
    %c0_i32_1 = arith.constant 0 : i32
    return %1, %c0_i32, %arg2, %c0_i32_0 : i32, i32, i32, i32
  }
  func.func @transform_1(%arg0: i32, %arg1: i32, %arg2: i32) -> (i32, i32, i32) {
    %c1_i32 = arith.constant 1 : i32
    %0 = arith.muli %arg0, %c1_i32 : i32
    %1 = arith.addi %0, %arg1 : i32
    %c0_i32 = arith.constant 0 : i32
    %c0_i32_0 = arith.constant 0 : i32
    return %1, %arg2, %c0_i32 : i32, i32, i32
  }
  func.func @transform_2(%arg0: i32, %arg1: i32, %arg2: i32) -> (i32, i32, i32, i32) {
    %c0_i32 = arith.constant 0 : i32
    %c0_i32_0 = arith.constant 0 : i32
    %c0_i32_1 = arith.constant 0 : i32
    %c0_i32_2 = arith.constant 0 : i32
    return %arg0, %c0_i32, %c0_i32_0, %c0_i32_1 : i32, i32, i32, i32
  }
  func.func @transform_3(%arg0: i32, %arg1: i32, %arg2: i32) -> (i32, i32, i32, i32) {
    %c0_i32 = arith.constant 0 : i32
    %c0_i32_0 = arith.constant 0 : i32
    %c0_i32_1 = arith.constant 0 : i32
    %c0_i32_2 = arith.constant 0 : i32
    return %arg0, %c0_i32, %c0_i32_0, %c0_i32_1 : i32, i32, i32, i32
  }
}

</mosaic_0001>

<bundles_post_ra>
// kernel: tpu_custom_call.1
= control target key start
LH: loop header
LB: loop body
LE: loop exit
PB: predicated region body
PF: predicated region fallthrough
CT: control target
= control target key end

     0   :  { %9 = vsyncpa [#allocation3], 0  ;;  %s1332_s0 = inlined_call_operand.hbm [shape: f32[2,4,1,256], index: 0, kind: input, shape index: {}]   ;;  %s1333_s1 = inlined_call_operand.hbm [shape: s32[2,1,256], index: 1, kind: input, shape index: {}]   ;;  %s1334_s2 = inlined_call_operand.hbm [shape: f32[2,4,1,256], index: 2, kind: output, shape index: {0}]   ;;  %s1335_s3 = inlined_call_operand.hbm [shape: f32[2,4,1,256], index: 3, kind: output, shape index: {1}]  }
   0x1   :  { %11 = vsyncpa [#allocation3 + $0x1], 0 }
   0x2   :  { %12 = vsyncpa [#allocation6], 0 }
   0x3   :  { %14 = vsyncpa [#allocation6 + $0x1], 0 }
   0x4   :  { %15 = vsyncpa [#allocation4], 0 }
   0x5   :  { %17 = vsyncpa [#allocation4 + $0x1], 0 }
   0x6   :  { %18 = vsyncpa [#allocation9], 0 }
   0x7   :  { %20 = vsyncpa [#allocation9 + $0x1], 0  ;;  %s979_s12 = smov 0   ;;  %s981_s13 = smov 0  }
   0x8   :  { %s983_s14 = smov 0   ;;  %s985_s15 = smov 0  }
   0x9   :  { %s987_s16 = smov 0   ;;  %s989_s17 = smov 0  }
   0xa LB: > { %s640_s18 = sadd.s32 4294967295, %s947_s17   ;;  %s641_s19 = sadd.s32 4294967294, %s947_s17   ;;  %s947_s17 = sphi %s989_s17, %s26_s17   ;;  %s943_s16 = sphi %s987_s16, %s1356_s16   ;;  %s939_s15 = sphi %s985_s15, %s1355_s15   ;;  %s935_s14 = sphi %s983_s14, %s1354_s14   ;;  %s931_s13 = sphi %s981_s13, %s1353_s13   ;;  %s927_s12 = sphi %s979_s12, %s1352_s12  }
   0xb   : > { %s45_s20 = sadd.s32 1, %s943_s16  ;;  %s56_s21 = sadd.s32 1, %s935_s14 }
   0xc   : > { %p47_p0 = scmp.ge.s32.totalorder %s45_s20, 2  ;;  %p63_p1 = scmp.ne.s32.totalorder %s935_s14, %s931_s13 }
   0xd   : > { %p64_p2 = scmp.eq.s32.totalorder %s947_s17, 0  ;;  %p69_p3 = scmp.ne.s32.totalorder %s931_s13, %s927_s12 }
   0xe   : > { %s1358_s20 = smov (%p47_p0, %s45_s20), 0  ;;  %p70_p5 = scmp.eq.s32.totalorder %s640_s18, 0 }
   0xf   : > { %p1020_p4 = por %p64_p2, %p63_p1  ;;  %s51_s23 = ssub.s32 %s943_s16, %s1358_s20 }
  0x10   : > { %p123_p6 = scmp.eq.s32.totalorder %s640_s18, 1  ;;  %p54_p7 = scmp.eq.s32.totalorder %s51_s23, 0 }
  0x11   : > { %p1026_p8 = por %p70_p5, %p69_p3  ;;  %p129_p10 = scmp.eq.s32.totalorder %s641_s19, 1 }
  0x12   : > { %p1030_p9 = por %p123_p6, %p63_p1  ;;  %p701_p13 = scmp.lt.s32.totalorder %s947_s17, 2 }
  0x13   : > { %s1339_s24 = scalar_select %p1026_p8, 1, 0 }
  0x14   : > { %s1340_s25 = scalar_select %p1030_p9, 1, 0 }
  0x15   : > { %s1035_s26 = scalar_select %p54_p7, %s935_s14, %s56_s21  }
  0x16   : > { %p1037_p11 = por %p129_p10, %p69_p3  ;;  %s1044_s28 = sand.u32 1, %s935_s14  }
  0x17   : > { %s644_s29 = sshll.u32 %s1044_s28, 3  ;;  %s675_s30 = sshll.u32 %s943_s16, 7 }
  0x18   : > { %s1341_s27 = scalar_select %p1037_p11, 1, 0 }
  0x19   : > { %s1051_s6 = scalar_lea.hbm %s1332_s0, %s675_s30  ;;  %s179_s7 = scalar_lea.vmem [#allocation2], %s644_s29 }
  0x1a   : > { %s189_s8 = sshll.u32 %s179_s7, 4  ;;  %p1057_p0 = pnand %p701_p13, %p1020_p4  ;;  %s1053_s8 = int_to_ptr.vmem [resolvable:$true] %s189_s8 }
  0x1b   : > { %s176_s10 = scalar_lea.sflag [#allocation3], %s1044_s28  ;;  %s769_s11 = scalar_lea.hbm %s1051_s6, 128 }
  0x1c   : > { %p770_p2 = scmp.ne.s32.totalorder %s1051_s6, %s769_s11  ;;  %p771_p3 = pneg %p1057_p0 }
  0x1d   : > { %s774_s21 = scalar_lea.hbm %s1332_s0, 256  ;;  %p775_p4 = scmp.lt.u32.totalorder %s1051_s6, %s1332_s0 }
  0x1e   : > { %p772_p5 = pnand %p771_p3, %p770_p2  ;;  %p776_p7 = scmp.lt.u32.totalorder %s774_s21, %s769_s11 }
  0x1f   : > { %p778_p13 = scmp.lt.u32.totalorder %s769_s11, %s1051_s6 }
  0x20   : > { %p773_p6 = pneg %p772_p5  ;;  %p777_p10 = por %p776_p7, %p775_p4 }
  0x22   : > { %p779_p12 = por %p778_p13, %p777_p10 }
  0x24   : > { %p780_p1 = pnand %p779_p12, %p773_p6 }
  0x26   : > { %783 = shalt.err (!%p780_p1)
}
  0x27   : > { %s784_s29 = scalar_lea.vmem %s1053_s8, 128  ;;  %s949_s30 = smov [#allocation2]  }
  0x28   : > { %p785_p2 = scmp.ne.s32.totalorder %s1053_s8, %s784_s29  ;;  %s789_s4 = sshll.u32 %s949_s30, 4  ;;  %s790_s4 = int_to_ptr.vmem [resolvable:$false] %s789_s4 }
  0x29   : > { %s791_s5 = scalar_lea.vmem %s790_s4, 256  ;;  %p792_p9 = scmp.lt.s32.totalorder %s1053_s8, %s790_s4 }
  0x2a   : > { %p787_p5 = pnand %p785_p2, %p771_p3  ;;  %p793_p4 = scmp.lt.s32.totalorder %s791_s5, %s784_s29 }
  0x2c   : > { %p788_p11 = pneg %p787_p5  ;;  %p794_p7 = por %p793_p4, %p792_p9 }
  0x2e   : > { %p795_p10 = pnand %p794_p7, %p788_p11 }
  0x30   : > { %798 = shalt.err (!%p795_p10)
}
  0x31   : > { %s950_s7 = smov 32   ;;  %s951_s11 = smov 2  }
  0x32   : > { %690 = dma.hbm_to_vmem [thread:$0]  (!%p1057_p0), %s1051_s6, 128, %s1053_s8, %s176_s10, %s950_s7, %s950_s7, %s951_s11  }
  0x33   : > { %p219_p12 = scmp.lt.s32.totalorder %s947_s17, 3  ;;  %s647_s18 = sshll.u32 %s1044_s28, 1 }
  0x34   : > { %s676_s19 = sshll.u32 %s943_s16, 5  ;;  %p1343_p9 = scmp.ge.s32.totalorder %s947_s17, 1 }
  0x35   : > { %s1102_s29 = scalar_lea.hbm %s1333_s1, %s676_s19  ;;  %s203_s30 = scalar_lea.vmem [#allocation5], %s647_s18 }
  0x36   : > { %p1095_p11 = pnand %p1343_p9, %p219_p12  ;;  %s214_s4 = sshll.u32 %s203_s30, 4  ;;  %s215_s4 = int_to_ptr.vmem [resolvable:$true] %s214_s4 }
  0x37   : > { %s200_s6 = scalar_lea.sflag [#allocation6], %s1044_s28  ;;  %s799_s8 = scalar_lea.hbm %s1102_s29, 32 }
  0x38   : > { %s1344_s21 = scalar_select %p1095_p11, 1, 0 }
  0x39   : > { %p800_p1 = scmp.ne.s32.totalorder %s1102_s29, %s799_s8  ;;  %s804_s7 = scalar_lea.hbm %s1333_s1, 64 }
  0x3a   : > { %p805_p2 = scmp.lt.u32.totalorder %s1102_s29, %s1333_s1  ;;  %p806_p5 = scmp.lt.u32.totalorder %s804_s7, %s799_s8 }
  0x3b   : > { %p802_p6 = pnand %p800_p1, %p771_p3  ;;  %p808_p7 = scmp.lt.u32.totalorder %s799_s8, %s1102_s29 }
  0x3c   : > { %p807_p4 = por %p806_p5, %p805_p2 }
  0x3d   : > { %p803_p13 = pneg %p802_p6 }
  0x3e   : > { %p809_p10 = por %p808_p7, %p807_p4 }
  0x40   : > { %p810_p12 = pnand %p809_p10, %p803_p13 }
  0x42   : > { %813 = shalt.err (!%p810_p12)
}
  0x43   : > { %s814_s28 = scalar_lea.vmem %s215_s4, 32  ;;  %s952_s18 = smov [#allocation5]  }
  0x44   : > { %p815_p9 = scmp.ne.s32.totalorder %s215_s4, %s814_s28  ;;  %s819_s22 = sshll.u32 %s952_s18, 4  ;;  %s820_s22 = int_to_ptr.vmem [resolvable:$false] %s819_s22 }
  0x45   : > { %s821_s23 = scalar_lea.vmem %s820_s22, 64  ;;  %p822_p8 = scmp.lt.s32.totalorder %s215_s4, %s820_s22 }
  0x46   : > { %p817_p1 = pnand %p815_p9, %p771_p3  ;;  %p823_p11 = scmp.lt.s32.totalorder %s821_s23, %s814_s28 }
  0x48   : > { %p818_p6 = pneg %p817_p1  ;;  %p824_p2 = por %p823_p11, %p822_p8 }
  0x4a   : > { %p825_p5 = pnand %p824_p2, %p818_p6 }
  0x4c   : > { %828 = shalt.err (!%p825_p5)
}
  0x4d   : > { %693 = dma.hbm_to_vmem [thread:$0]  (!%p1057_p0), %s1102_s29, 32, %s215_s4, %s200_s6  }
  0x4e   : > { %p1345_p13 = scmp.ne.s32.totalorder %s1344_s21, 0 }
  0x4f   : > { %s1127_s30 = sand.u32 (!%p1345_p13), 1, %s931_s13   ;;  %p1346_p3 = scmp.ne.s32.totalorder (!%p1345_p13), %s1339_s24, 0 }
  0x50   : > { %223 = sbr.rel (%p1345_p13) target bundleno = 189 (0xbd), region = 28  ;;  %s651_s8 = sshll.u32 (!%p1345_p13), %s1127_s30, 3 }
  0x51   : > { %s226_s10 = scalar_lea.sflag (!%p1345_p13), [#allocation3], %s1127_s30  ;;  %s229_s5 = scalar_lea.vmem (!%p1345_p13), [#allocation2], %s651_s8 }
  0x57   : > { %910 = dma.done.wait (%p1346_p3), %s226_s10, 128  }
  0x58   : > { %912 = vsyncadd (%p1346_p3), %s226_s10, 4294967168  ;;  %s652_s9 = sshll.u32 %s1127_s30, 1  ;;  %s235_s21 = scalar_lea.sflag [#allocation6], %s1127_s30 }
  0x59   : > { %s1137_s29 = scalar_lea.vmem [#allocation5], %s652_s9 }
  0x5a   : > { %914 = dma.done.wait (%p1346_p3), %s235_s21, 32  }
  0x5b   : > { %916 = vsyncadd (%p1346_p3), %s235_s21, 4294967264  ;;  %v279_v0 = vlaneseq  ;;  %s1147_s4 = scalar_lea.vmem [#allocation7], %s651_s8  ;;  %v953_v2 = vmov 0.0   ;;  %s1161_s24 = scalar_lea.vmem [#allocation8], %s651_s8  ;;  %v291_v3 = vld [vmem:[%s229_s5] sm:$0x3] }
  0x5c   : > { %v292_v4 = vld [vmem:[%s229_s5 + $0x2] sm:$0x3]  ;;  %v293_v5 = vld [vmem:[%s229_s5 + $0x4] sm:$0x3]  ;;  %v294_v6 = vld [vmem:[%s229_s5 + $0x6] sm:$0x3] }
  0x5d   : > { %vm1143_vm0 = vcmp.lt.s32.totalorder %v279_v0, 256  ;;  %v324_v22 = vshrl.u32 %v279_v0, 7  ;;  %vm363_vm1 = vcmask 1040384   ;;  %v954_v51 = vmov 1966171168   ;;  %s677_s6 = sshll.u32 %s939_s15, 7 }
  0x5e   : > { %283 = vst.msk [vmem:[%s1147_s4] sm:$0x3] %vm1143_vm0, %v953_v2  ;;  %284 = vst.msk [vmem:[%s1147_s4 + $0x2] sm:$0x3] %vm1143_vm0, %v953_v2  ;;  %v300_v7 = vsel %vm1143_vm0, %v291_v3, -inf  ;;  %v301_v8 = vsel %vm1143_vm0, %v292_v4, -inf  ;;  %v386_v52 = vunpack.c.l.s4 %v954_v51  ;;  %s1212_s28 = scalar_lea.hbm %s1334_s2, %s677_s6 }
  0x5f   : > { %285 = vst.msk [vmem:[%s1147_s4 + $0x4] sm:$0x3] %vm1143_vm0, %v953_v2  ;;  %286 = vst.msk [vmem:[%s1147_s4 + $0x6] sm:$0x3] %vm1143_vm0, %v953_v2  ;;  %v302_v9 = vsel %vm1143_vm0, %v293_v5, -inf  ;;  %v303_v10 = vsel %vm1143_vm0, %v294_v6, -inf  ;;  %v304_v11 = vmax.f32 %v300_v7, %v301_v8 }
  0x60   : > { %287 = vst.msk [vmem:[%s1161_s24] sm:$0x3] %vm1143_vm0, %v953_v2  ;;  %288 = vst.msk [vmem:[%s1161_s24 + $0x2] sm:$0x3] %vm1143_vm0, %v953_v2  ;;  %v305_v12 = vmax.f32 %v302_v9, %v303_v10  ;;  %v325_v23 = vsub.s32 0, %v324_v22  ;;  %v329_v24 = vsub.s32 1, %v324_v22  ;;  %v387_v53 = vunpack.c.0.s8 %v386_v52 }
  0x61   : > { %289 = vst.msk [vmem:[%s1161_s24 + $0x4] sm:$0x3] %vm1143_vm0, %v953_v2  ;;  %290 = vst.msk [vmem:[%s1161_s24 + $0x6] sm:$0x3] %vm1143_vm0, %v953_v2  ;;  %v295_v58 = vld [vmem:[%s1137_s29] sm:$0x3] }
  0x62   : > { %v306_v13 = vmax.f32 %v304_v11, %v305_v12  ;;  %v390_v55 = vsub.s32 %v387_v53, %v324_v22  ;;  %vm401_vm2 = vcmp.eq.s32.totalorder %v295_v58, 0  ;;  %vm414_vm3 = vcmp.eq.s32.totalorder %v295_v58, 1  ;;  %s477_s7 = sshll.u32 %s1147_s4, 4  ;;  %s493_s18 = sshll.u32 %s1161_s24, 4  ;;  %s1214_s7 = int_to_ptr.vmem [resolvable:$true] %s477_s7  ;;  %s1277_s18 = int_to_ptr.vmem [resolvable:$true] %s493_s18 }
  0x63   : > { %vm429_vm4 = vcmp.eq.s32.totalorder %v295_v58, 2  ;;  %vm444_vm5 = vcmp.eq.s32.totalorder %v295_v58, 3  ;;  %s459_s22 = scalar_lea.sflag [#allocation4], %s1127_s30  ;;  %s829_s23 = scalar_lea.vmem %s1214_s7, 128 }
  0x64   : > { %v307_v14 = vsub.f32 %v291_v3, %v306_v13  ;;  %v308_v15 = vsub.f32 %v292_v4, %v306_v13  ;;  %v309_v16 = vsub.f32 %v293_v5, %v306_v13  ;;  %v310_v17 = vsub.f32 %v294_v6, %v306_v13  ;;  %p830_p8 = scmp.ne.s32.totalorder %s1214_s7, %s829_s23  ;;  %p1349_p0 = scmp.ne.s32.totalorder %s1340_s25, 0 }
  0x65   : > { %v407_v61 = vld [vmem:[%s1147_s4] sm:$0x3]  ;;  %v655_v2 = vld [vmem:[%s1147_s4 + $0x2] sm:$0x3]  ;;  %s955_s8 = smov [#allocation7]  }
  0x66   : > { %v311_v18 = vmul.f32 1.442695, %v307_v14  ;;  %v313_v19 = vmul.f32 1.442695, %v308_v15  ;;  %v315_v20 = vmul.f32 1.442695, %v309_v16  ;;  %p831_p11 = pnand %p830_p8, %p1349_p0 }
  0x67   : > { %v317_v21 = vmul.f32 1.442695, %v310_v17  ;;  %v410_v63 = vld [vmem:[%s1161_s24] sm:$0x3]  ;;  %v657_v4 = vld [vmem:[%s1161_s24 + $0x2] sm:$0x3] }
  0x68   : > { %757 = vpow2.f32 %v311_v18  ;;  %v659_v5 = vld [vmem:[%s1147_s4 + $0x4] sm:$0x3]  ;;  %v663_v11 = vld [vmem:[%s1147_s4 + $0x6] sm:$0x3]  ;;  %v661_v16 = vld [vmem:[%s1161_s24 + $0x4] sm:$0x3]  ;;  %p832_p4 = pneg %p831_p11 }
  0x69   : > { %759 = vpow2.f32 %v313_v19  ;;  %s833_s10 = sshll.u32 %s955_s8, 4  ;;  %s834_s10 = int_to_ptr.vmem [resolvable:$false] %s833_s10 }
  0x6a   : > { %761 = vpow2.f32 %v315_v20  ;;  %s835_s5 = scalar_lea.vmem %s834_s10, 256  ;;  %p836_p7 = scmp.lt.s32.totalorder %s1214_s7, %s834_s10 }
  0x6b   : > { %763 = vpow2.f32 %v317_v21  ;;  %p837_p10 = scmp.lt.s32.totalorder %s835_s5, %s829_s23 }
  0x6d   : > { %p838_p12 = por %p837_p10, %p836_p7 }
  0x6f   : > { %p839_p9 = pnand %p838_p12, %p832_p4 }
  0x72   : > { %v758_v25 = vpop.eup %757 }
  0x73   : > { %v760_v26 = vpop.eup %759  ;;  %v326_v27 = vrot.slane %v758_v25, %v325_v23  ;;  %v330_v28 = vrot.slane %v758_v25, %v329_v24 }
  0x74   : > { %v762_v29 = vpop.eup %761  ;;  %v334_v30 = vrot.slane %v760_v26, %v325_v23  ;;  %v338_v31 = vrot.slane %v760_v26, %v329_v24 }
  0x75   : > { %v764_v32 = vpop.eup %763  ;;  %v342_v33 = vrot.slane %v762_v29, %v325_v23  ;;  %v346_v34 = vrot.slane %v762_v29, %v329_v24  ;;  %v364_v35 = vsel %vm363_vm1, %v326_v27, 0.0  ;;  %v371_v36 = vsel %vm363_vm1, %v330_v28, 0.0  ;;  %v665_v27 = vld [vmem:[%s1161_s24 + $0x6] sm:$0x3] }
  0x76   : > { %v350_v37 = vrot.slane %v764_v32, %v325_v23  ;;  %v354_v38 = vrot.slane %v764_v32, %v329_v24  ;;  %v365_v39 = vsel %vm363_vm1, %v334_v30, 0.0  ;;  %v372_v40 = vsel %vm363_vm1, %v338_v31, 0.0 }
  0x77   : > { %v366_v41 = vadd.f32 %v365_v39, %v364_v35  ;;  %v367_v42 = vsel %vm363_vm1, %v342_v33, 0.0  ;;  %v373_v43 = vadd.f32 %v372_v40, %v371_v36  ;;  %v374_v44 = vsel %vm363_vm1, %v346_v34, 0.0 }
  0x78   : > { %v369_v45 = vsel %vm363_vm1, %v350_v37, 0.0  ;;  %v376_v46 = vsel %vm363_vm1, %v354_v38, 0.0 }
  0x79   : > { %v368_v47 = vadd.f32 %v367_v42, %v366_v41  ;;  %v375_v48 = vadd.f32 %v374_v44, %v373_v43 }
  0x7b   : > { %v370_v49 = vadd.f32 %v369_v45, %v368_v47  ;;  %v377_v50 = vadd.f32 %v376_v46, %v375_v48 }
  0x7d   : > { %765 = vrcp.f32 %v370_v49 }
  0x7e   : > { %767 = vrcp.f32 %v377_v50 }
  0x87   : > { %v766_v54 = vpop.eup %765 }
  0x88   : > { %v768_v56 = vpop.eup %767 }
  0x89   : > { %v384_v57 = vcombine.low %v766_v54, %v768_v56 }
  0x8b   : > { %v391_v59 = vrot.slane %v384_v57, %v390_v55 }
  0x8d   : > { %v398_v60 = vrot.slane %v391_v59, %v390_v55 }
  0x8f   : > { %v400_v62 = vmul.f32 %v758_v25, %v398_v60  ;;  %v413_v0 = vmul.f32 %v760_v26, %v398_v60  ;;  %v428_v3 = vmul.f32 %v762_v29, %v398_v60  ;;  %v443_v6 = vmul.f32 %v764_v32, %v398_v60 }
  0x91   : > { %v402_v7 = vsel %vm401_vm2, %v400_v62, 0.0  ;;  %v403_v8 = vadd.f32 1.0, %v400_v62  ;;  %v415_v9 = vsel %vm414_vm3, %v413_v0, 0.0  ;;  %v416_v10 = vadd.f32 1.0, %v413_v0 }
  0x92   : > { %v408_v12 = vadd.f32 %v407_v61, %v402_v7  ;;  %v422_v13 = vadd.f32 %v655_v2, %v415_v9  ;;  %v430_v14 = vsel %vm429_vm4, %v428_v3, 0.0  ;;  %v431_v15 = vadd.f32 1.0, %v428_v3 }
  0x93   : > { %v404_v17 = vsel %vm401_vm2, %v403_v8, %v400_v62  ;;  %v417_v18 = vsel %vm414_vm3, %v416_v10, %v413_v0  ;;  %v437_v19 = vadd.f32 %v659_v5, %v430_v14  ;;  %v445_v20 = vsel %vm444_vm5, %v443_v6, 0.0 }
  0x94   : > { %409 = vst.msk [vmem:[%s1147_s4] sm:$0x3] %vm1143_vm0, %v408_v12  ;;  %v411_v21 = vadd.f32 %v410_v63, %v404_v17  ;;  %656 = vst.msk [vmem:[%s1147_s4 + $0x2] sm:$0x3] %vm1143_vm0, %v422_v13  ;;  %v426_v22 = vadd.f32 %v657_v4, %v417_v18  ;;  %v432_v23 = vsel %vm429_vm4, %v431_v15, %v428_v3  ;;  %v446_v26 = vadd.f32 1.0, %v443_v6 }
  0x95   : > { %v452_v24 = vadd.f32 %v663_v11, %v445_v20  ;;  %660 = vst.msk [vmem:[%s1147_s4 + $0x4] sm:$0x3] %vm1143_vm0, %v437_v19  ;;  %v441_v25 = vadd.f32 %v661_v16, %v432_v23 }
  0x96   : > { %412 = vst.msk [vmem:[%s1161_s24] sm:$0x3] %vm1143_vm0, %v411_v21  ;;  %658 = vst.msk [vmem:[%s1161_s24 + $0x2] sm:$0x3] %vm1143_vm0, %v426_v22  ;;  %v447_v28 = vsel %vm444_vm5, %v446_v26, %v443_v6 }
  0x97   : > { %664 = vst.msk [vmem:[%s1147_s4 + $0x6] sm:$0x3] %vm1143_vm0, %v452_v24  ;;  %662 = vst.msk [vmem:[%s1161_s24 + $0x4] sm:$0x3] %vm1143_vm0, %v441_v25 }
  0x98   : > { %842 = shalt.err (!%p839_p9)
}
  0x99   : > { %s843_s9 = scalar_lea.hbm %s1212_s28, 128  ;;  %s847_s4 = scalar_lea.hbm %s1334_s2, 256 }
  0x9a   : > { %p844_p1 = scmp.ne.s32.totalorder %s1212_s28, %s843_s9  ;;  %p848_p5 = scmp.lt.u32.totalorder %s1212_s28, %s1334_s2 }
  0x9b   : > { %p849_p13 = scmp.lt.u32.totalorder %s847_s4, %s843_s9  ;;  %p851_p8 = scmp.lt.u32.totalorder %s843_s9, %s1212_s28 }
  0x9c   : > { %p845_p6 = pnand %p844_p1, %p1349_p0 }
  0x9d   : > { %p850_p3 = por %p849_p13, %p848_p5 }
  0x9e   : > { %p846_p2 = pneg %p845_p6 }
  0x9f   : > { %p852_p11 = por %p851_p8, %p850_p3 }
  0xa1   : > { %p853_p4 = pnand %p852_p11, %p846_p2 }
  0xa3   : > { %856 = shalt.err (!%p853_p4)
}
  0xa4   : > { %s956_s23 = smov 32   ;;  %s957_s8 = smov 2   ;;  %v456_v29 = vadd.f32 %v665_v27, %v447_v28 }
  0xa5   : > { %683 = dma.vmem_to_hbm [thread:$0]  (%p1349_p0), %s1214_s7, 128, %s1212_s28, %s459_s22, %s956_s23, %s956_s23, %s957_s8  }
  0xa6   : > { %s1273_s9 = scalar_lea.hbm %s1335_s3, %s677_s6  ;;  %666 = vst.msk [vmem:[%s1161_s24 + $0x6] sm:$0x3] %vm1143_vm0, %v456_v29  ;;  %s464_s21 = scalar_lea.sflag [#allocation9], %s1127_s30 }
  0xa7   : > { %s857_s29 = scalar_lea.vmem %s1277_s18, 128  ;;  %s958_s15 = smov [#allocation8]  }
  0xa8   : > { %p858_p7 = scmp.ne.s32.totalorder %s1277_s18, %s857_s29  ;;  %s861_s7 = sshll.u32 %s958_s15, 4  ;;  %s862_s7 = int_to_ptr.vmem [resolvable:$false] %s861_s7 }
  0xa9   : > { %s863_s6 = scalar_lea.vmem %s862_s7, 256  ;;  %p864_p9 = scmp.lt.s32.totalorder %s1277_s18, %s862_s7 }
  0xaa   : > { %p859_p10 = pnand %p858_p7, %p1349_p0  ;;  %p865_p1 = scmp.lt.s32.totalorder %s863_s6, %s857_s29 }
  0xac   : > { %p860_p12 = pneg %p859_p10  ;;  %p866_p6 = por %p865_p1, %p864_p9 }
  0xae   : > { %p867_p2 = pnand %p866_p6, %p860_p12 }
  0xb0   : > { %870 = shalt.err (!%p867_p2)
}
  0xb1   : > { %s871_s24 = scalar_lea.hbm %s1273_s9, 128  ;;  %s875_s4 = scalar_lea.hbm %s1335_s3, 256 }
  0xb2   : > { %p872_p5 = scmp.ne.s32.totalorder %s1273_s9, %s871_s24  ;;  %p876_p8 = scmp.lt.u32.totalorder %s1273_s9, %s1335_s3 }
  0xb3   : > { %p877_p11 = scmp.lt.u32.totalorder %s875_s4, %s871_s24  ;;  %p879_p7 = scmp.lt.u32.totalorder %s871_s24, %s1273_s9 }
  0xb4   : > { %p873_p13 = pnand %p872_p5, %p1349_p0 }
  0xb5   : > { %p878_p4 = por %p877_p11, %p876_p8 }
  0xb6   : > { %p874_p3 = pneg %p873_p13 }
  0xb7   : > { %p880_p10 = por %p879_p7, %p878_p4 }
  0xb9   : > { %p881_p12 = pnand %p880_p10, %p874_p3 }
  0xbb   : > { %884 = shalt.err (!%p881_p12)
}
  0xbc   : > { %684 = dma.vmem_to_hbm [thread:$0]  (%p1349_p0), %s1277_s18, 128, %s1273_s9, %s464_s21, %s956_s23, %s956_s23, %s957_s8  }
  0xbd PF: > { %s508_s10 = sand.u32 1, %s927_s12   ;;  %p1350_p9 = scmp.ne.s32.totalorder %s1341_s27, 0 }
  0xbe   : > { %p1351_p1 = scmp.ge.s32.totalorder %s947_s17, 2  ;;  %s509_s5 = scalar_lea.sflag [#allocation4], %s508_s10 }
  0xc0   : > { %p695_p6 = pnand %p1351_p1, %p1350_p9 }
  0xc2   : > { %918 = dma.done.wait (!%p695_p6), %s509_s5, 128  }
  0xc3   : > { %920 = vsyncadd (!%p695_p6), %s509_s5, 4294967168  ;;  %s518_s25 = scalar_lea.sflag [#allocation9], %s508_s10 }
  0xc4   : > { %922 = dma.done.wait (!%p695_p6), %s518_s25, 128  }
  0xc5   : > { %924 = vsyncadd (!%p695_p6), %s518_s25, 4294967168  ;;  %s26_s17 = sadd.s32 1, %s947_s17   ;;  %s1352_s12 = smov %s931_s13 }
  0xc6   : > { %p23_p2 = scmp.ge.s32.totalorder %s26_s17, 4   ;;  %s1353_s13 = smov %s935_s14 }
  0xc7   : > { %s1354_s14 = smov %s1035_s26  ;;  %s1355_s15 = smov %s943_s16 }
  0xc8   : > { %s1356_s16 = smov %s1358_s20  ;;  %25 = sbr.rel (!%p23_p2) target bundleno = 10 (0xa), region = 113 }
  0xcf   :  { %523 = vsyncpa [#allocation3], 1 }
  0xd0   :  { %525 = vsyncpa [#allocation3 + $0x1], 1 }
  0xd1   :  { %526 = vsyncpa [#allocation6], 1 }
  0xd2   :  { %528 = vsyncpa [#allocation6 + $0x1], 1 }
  0xd3   :  { %529 = vsyncpa [#allocation4], 1 }
  0xd4   :  { %531 = vsyncpa [#allocation4 + $0x1], 1 }
  0xd5   :  { %532 = vsyncpa [#allocation9], 1 }
  0xd6   :  { %534 = vsyncpa [#allocation9 + $0x1], 1 }

</bundles_post_ra>
